<compile_context>
chip_gen: v7x
topology: tpu7x:2x2x1
jax: 0.10.0
libtpu: 0.0.40
codegen_flags: <defaults>
</compile_context>

<pallas_src>
import functools

import jax
import jax.numpy as jnp
from jax import lax
from jax.experimental import pallas as pl
from jax.experimental.pallas import tpu as pltpu

_LANE = 128


# ----------------------------------------------------------------------------- kernel
def hybrid_attention_kernel(
    x_ref,       # (Bt, S, D)      f32
    wqkv_ref,    # (D, 3*A_pad)    bf16  (pre-transposed; 1/sqrt(A) folded into Q section)
    bqkv_ref,    # (1, 3*A_pad)    f32
    w1_ref,      # (D, H)          bf16  (pre-transposed)
    b1_ref,      # (1, H)          f32
    w2_ref,      # (H, D)          bf16  (pre-transposed)
    b2_ref,      # (1, D)          f32
    out_ref,     # (Bt, S*D) or (Bt, S, D)   f32 hybrid output
    attn_ref,    # (Bt, S*S) or (Bt, S, S)   attn weights (default bf16)
    *,
    a_pad,           # lane-aligned per-section width of the fused QKV matrix
    use_bf16_exp,    # bf16 exp on v6e/v7x, f32 on v5e
    approx_recip,    # EUP approx reciprocal for the softmax denominator
    flatten,         # lane-dense (flattened) output stores
):
    f32 = jnp.float32
    bf16 = jnp.bfloat16
    Bt, S, D = x_ref.shape

    x = x_ref[...]                                   # (Bt, S, D) f32, reused by both branches
    x2d_bf = x.reshape(Bt * S, D).astype(bf16)       # MXU operand

    # ---- fused QKV projection: one MXU matmul, M = Bt*S, N = 3*A_pad ----
    qkv = jnp.dot(x2d_bf, wqkv_ref[...], preferred_element_type=f32) + bqkv_ref[...]
    # lane-aligned, free slices (each section is a multiple of 128 columns)
    q = qkv[:, :a_pad].reshape(Bt, S, a_pad)                 # scale already folded in
    k = qkv[:, a_pad:2 * a_pad].reshape(Bt, S, a_pad)
    v = qkv[:, 2 * a_pad:].reshape(Bt, S, a_pad)

    # ---- scores: contract the (padded) feature dim directly (no K transpose on XLU) ----
    scores = lax.dot_general(
        q.astype(bf16), k.astype(bf16),
        dimension_numbers=(((2,), (2,)), ((0,), (0,))),
        preferred_element_type=f32)                          # (Bt, S, S)

    # numerically-stable softmax along last dim (matches torch.nn.Softmax(dim=-1))
    m = jnp.max(scores, axis=-1, keepdims=True)
    centered = scores - m
    if use_bf16_exp:
        e = jnp.exp(centered.astype(bf16)).astype(f32)       # EUP bf16 path (v6e/v7x)
    else:
        e = jnp.exp(centered)                                # f32 path (v5e / unknown)
    denom = jnp.sum(e, axis=-1, keepdims=True)
    if approx_recip:
        attn = e * pl.reciprocal(denom, approx=True)
    else:
        attn = e / denom

    sa = lax.dot_general(
        attn.astype(bf16), v.astype(bf16),
        dimension_numbers=(((2,), (1,)), ((0,), (0,))),
        preferred_element_type=f32)                          # (Bt, S, A_pad)

    # ---- channel-attention branch, batched over Bt ----
    channel_avg = jnp.mean(x, axis=1)                        # (Bt, D) f32
    h = jnp.dot(channel_avg.astype(bf16), w1_ref[...],
                preferred_element_type=f32) + b1_ref[...]    # (Bt, H)
    g = jnp.dot(h.astype(bf16), w2_ref[...],
                preferred_element_type=f32) + b2_ref[...]    # (Bt, D)
    channel_out = x * jax.nn.sigmoid(g)[:, None, :]          # broadcast over seq

    # ---- combine (padded sa columns are exactly zero -> drop them) ----
    hybrid = sa[:, :, :D] + channel_out
    attn_out = attn.astype(attn_ref.dtype)

    if flatten:
        out_ref[...] = hybrid.reshape(Bt, S * D).astype(out_ref.dtype)
        attn_ref[...] = attn_out.reshape(Bt, S * S)
    else:
        out_ref[...] = hybrid.astype(out_ref.dtype)
        attn_ref[...] = attn_out


# ----------------------------------------------------------------------------- helpers
def _round_up(n, m):
    return -(-n // m) * m


def _pad_last(a, n):
    pad = n - a.shape[-1]
    if pad == 0:
        return a
    return jnp.pad(a, [(0, 0)] * (a.ndim - 1) + [(0, pad)])


def _tpu_generation():
    try:
        kind = jax.devices()[0].device_kind.lower()
    except Exception:
        return 0
    for g in (7, 6, 5, 4, 3, 2):
        if "v%d" % g in kind:
            return g
    return 0


def _budgets():
    """Per-generation (gen, num_cores, vmem_limit_bytes, tile_budget_bytes)."""
    gen = _tpu_generation()
    vmem_cap = None
    try:
        vmem_cap = int(pltpu.get_tpu_info().vmem_capacity_bytes)
    except Exception:
        vmem_cap = None
    if vmem_cap is None:
        # v7x: 64 MiB physical; v5e/v6e: 128 MiB. Unknown -> be conservative.
        vmem_cap = (64 if (gen >= 7 or gen == 0) else 128) * 1024 * 1024
    num_cores = 2 if gen >= 7 else 1
    desired = (48 if (gen >= 7 or gen == 0) else 96) * 1024 * 1024
    vmem_limit = max(32 * 1024 * 1024, min(desired, vmem_cap * 3 // 4))
    tile_budget = int(vmem_limit * 0.7)   # headroom for compiler scratch / spills
    return gen, num_cores, vmem_limit, tile_budget


def _vmem_bytes_estimate(bt, S, D, a_pad, H, attn_itemsize):
    """Rough per-grid-step VMEM footprint, including the O(S^2) softmax terms."""
    f32, bf16 = 4, 2
    rows = bt * S
    total = 2 * rows * D * f32                       # x block (double-buffered)
    total += 2 * rows * D * f32                      # hybrid-output block
    total += 2 * bt * S * S * attn_itemsize          # attn-output block
    wbytes = (D * 3 * a_pad * bf16 + 3 * a_pad * f32
              + D * H * bf16 + H * f32 + H * D * bf16 + D * f32)
    total += 2 * wbytes                              # resident weights (counted 2x)
    total += rows * D * (f32 + bf16)                 # x value + bf16 cast
    total += rows * 3 * a_pad * (f32 + bf16)         # qkv f32 + q/k/v bf16 casts
    total += bt * S * S * (3 * f32 + bf16)           # scores, exp, attn f32 + attn bf16
    total += rows * a_pad * f32                      # sa accumulator
    total += rows * D * f32                          # channel_out
    return total


def _pick_batch_tile(B, S, D, a_pad, H, attn_itemsize, vmem_budget, num_cores):
    """Largest batch tile that fits the VMEM budget; keep >= num_cores grid steps
    (v7x megacore) and prefer a step count divisible by num_cores."""
    divisors = [c for c in range(1, B + 1) if B % c == 0]
    feasible = [c for c in divisors
                if _vmem_bytes_estimate(c, S, D, a_pad, H, attn_itemsize) <= vmem_budget]
    if not feasible:
        # TODO(synk): flash-style KV-tile grid axis for large seq_len.
        raise ValueError(
            "HybridAttention Pallas kernel: a single-sequence block does not fit the "
            "VMEM budget (seq_len too large for the single-pass (S,S) softmax).")
    preferred = [c for c in feasible if (B // c) >= num_cores]
    pool = preferred if preferred else feasible
    return max(pool, key=lambda c: (((B // c) % num_cores) == 0, c))


# ----------------------------------------------------------------------------- wrapper
def hybrid_attention(x, params, *, batch_block=None, attn_dtype=jnp.bfloat16,
                     approx_softmax_recip=True):
    """x: (B, S, D) float32. Returns (hybrid_output (B,S,D) f32, attn_weights (B,S,S)).

    attn_dtype / approx_softmax_recip: documented precision tradeoffs — attention
    weights are written in bf16 and normalized with the EUP approx reciprocal by
    default; set attn_dtype=jnp.float32, approx_softmax_recip=False for exact rows.
    """
    B, S, D = x.shape
    A, Din = params["wq"].shape
    assert Din == D
    assert A == D, "PyTorch module implicitly requires attention_dim == input_dim for the final add"
    H = params["w1"].shape[0]
    A_pad = _round_up(A, _LANE)

    gen, num_cores, vmem_limit, tile_budget = _budgets()
    attn_itemsize = jnp.dtype(attn_dtype).itemsize

    if batch_block is None:
        bt = _pick_batch_tile(B, S, D, A_pad, H, attn_itemsize, tile_budget, num_cores)
    else:
        bt = batch_block
    assert B % bt == 0

    # Lane-dense flattened outputs only when the flattened block's sublane dim is
    # layout-safe (bt == B or a multiple of 8); otherwise keep the 3-D blocks.
    flatten = (bt == B) or (bt % 8 == 0)

    # ---- host-side weight prep: transpose, fuse, fold 1/sqrt(A) into Q, pad to lanes ----
    bf16 = jnp.bfloat16
    f32 = jnp.float32
    scale = 1.0 / float(A) ** 0.5
    wqkv = jnp.concatenate([
        _pad_last(params["wq"].T * scale, A_pad),
        _pad_last(params["wk"].T, A_pad),
        _pad_last(params["wv"].T, A_pad)], axis=1).astype(bf16)           # (D, 3*A_pad)
    bqkv = jnp.concatenate([
        _pad_last(params["bq"] * scale, A_pad),
        _pad_last(params["bk"], A_pad),
        _pad_last(params["bv"], A_pad)], axis=1).astype(f32)              # (1, 3*A_pad)
    w1t = params["w1"].T.astype(bf16)                                     # (D, H)
    w2t = params["w2"].T.astype(bf16)                                     # (H, D)
    b1 = params["b1"].astype(f32)
    b2 = params["b2"].astype(f32)

    def full(shape):
        nd = len(shape)
        return pl.BlockSpec(shape, lambda b, nd=nd: (0,) * nd)

    if flatten:
        out_shapes = (jax.ShapeDtypeStruct((B, S * D), jnp.float32),
                      jax.ShapeDtypeStruct((B, S * S), attn_dtype))
        out_specs = [pl.BlockSpec((bt, S * D), lambda b: (b, 0)),
                     pl.BlockSpec((bt, S * S), lambda b: (b, 0))]
    else:
        out_shapes = (jax.ShapeDtypeStruct((B, S, D), jnp.float32),
                      jax.ShapeDtypeStruct((B, S, S), attn_dtype))
        out_specs = [pl.BlockSpec((bt, S, D), lambda b: (b, 0, 0)),
                     pl.BlockSpec((bt, S, S), lambda b: (b, 0, 0))]

    grid_spec = pltpu.PrefetchScalarGridSpec(
        num_scalar_prefetch=0,
        grid=(B // bt,),
        in_specs=[
            pl.BlockSpec((bt, S, D), lambda b: (b, 0, 0)),   # x
            full((D, 3 * A_pad)), full((1, 3 * A_pad)),      # fused Wqkv, bqkv (resident)
            full((D, H)), full((1, H)),                      # W1.T, b1
            full((H, D)), full((1, D)),                      # W2.T, b2
        ],
        out_specs=out_specs,
    )

    cost = pl.CostEstimate(
        flops=int(2 * B * S * D * 3 * A_pad          # fused QKV
                  + 4 * B * S * S * A_pad            # QK^T and PV
                  + 4 * B * D * H                    # channel MLP
                  + 6 * B * S * D),                  # elementwise
        transcendentals=int(B * S * S + B * S + B * D),
        bytes_accessed=int(2 * B * S * D * 4
                           + B * S * S * attn_itemsize
                           + 2 * (D * 3 * A_pad + D * H + H * D)
                           + 4 * (3 * A_pad + H + D)),
    )

    kernel = functools.partial(
        hybrid_attention_kernel,
        a_pad=A_pad,
        use_bf16_exp=(gen >= 6),          # bf16 EUP path on v6e/v7x only
        approx_recip=approx_softmax_recip,
        flatten=flatten,
    )

    out, attn = pl.pallas_call(
        kernel,
        out_shape=out_shapes,
        grid_spec=grid_spec,
        compiler_params=pltpu.CompilerParams(
            dimension_semantics=("parallel",),
            vmem_limit_bytes=vmem_limit,
        ),
        cost_estimate=cost,
    )(x, wqkv, bqkv, w1t, b1, w2t, b2)

    if flatten:
        out = out.reshape(B, S, D)
        attn = attn.reshape(B, S, S)
    return out, attn


# ----------------------------------------------------------------------------- demo
def init_params(key, input_dim, attention_dim):
    """Deterministic synthetic parameter init (nn.Linear shapes: W = (out, in))."""
    D, A, H = input_dim, attention_dim, input_dim // 2
    ks = jax.random.split(key, 10)

    def lin(kw, kb, out_f, in_f):
        bound = 1.0 / jnp.sqrt(jnp.asarray(in_f, jnp.float32))
        w = jax.random.uniform(kw, (out_f, in_f), jnp.float32, -bound, bound)
        b = jax.random.uniform(kb, (1, out_f), jnp.float32, -bound, bound)
        return w, b

    wq, bq = lin(ks[0], ks[1], A, D)
    wk, bk = lin(ks[2], ks[3], A, D)
    wv, bv = lin(ks[4], ks[5], A, D)
    w1, b1 = lin(ks[6], ks[7], H, D)
    w2, b2 = lin(ks[8], ks[9], D, H)
    return dict(wq=wq, bq=bq, wk=wk, bk=bk, wv=wv, bv=bv,
                w1=w1, b1=b1, w2=w2, b2=b2)


def reference(x, p):
    """Pure-JAX f32 reference mirroring the PyTorch forward."""
    q = x @ p["wq"].T + p["bq"][0]
    k = x @ p["wk"].T + p["bk"][0]
    v = x @ p["wv"].T + p["bv"][0]
    scores = jnp.einsum("bqa,bka->bqk", q, k) / jnp.sqrt(jnp.float32(q.shape[-1]))
    attn = jax.nn.softmax(scores, axis=-1)
    sa_out = jnp.einsum("bqk,bka->bqa", attn, v)
    channel_avg = jnp.mean(x, axis=1)
    cw = jax.nn.sigmoid((channel_avg @ p["w1"].T + p["b1"][0]) @ p["w2"].T + p["b2"][0])
    return sa_out + x * cw[:, None, :], attn


if __name__ == "__main__":
    # Small shapes consistent with the module: batch=2, seq=8, input_dim=attention_dim=32.
    B, S, D, A = 2, 8, 32, 32
    key = jax.random.PRNGKey(0)
    kx, kp = jax.random.split(key)
    x = jax.random.normal(kx, (B, S, D), dtype=jnp.float32)
    params = init_params(kp, D, A)

    out, attn = hybrid_attention(x, params)
    jax.block_until_ready((out, attn))

    ref_out, ref_attn = reference(x, params)
    assert out.shape == (B, S, D) and attn.shape == (B, S, S)
    # bf16 MXU operands, bf16 exp (on v6e/v7x), bf16 attn output and approx
    # reciprocal => relaxed tolerances vs the f32 reference.
    assert jnp.allclose(out, ref_out, atol=5e-2, rtol=5e-2), "hybrid output mismatch"
    assert jnp.allclose(attn.astype(jnp.float32), ref_attn, atol=3e-2, rtol=3e-2), \
        "attention weights mismatch"

    print("KERNEL_OK")
</pallas_src>

<mosaic_0001>
module attributes {stable_mosaic.version = 11 : i64} {
  func.func @hybrid_attention_kernel(%arg0: i32, %arg1: memref<2x8x32xf32, #tpu.memory_space<vmem>>, %arg2: memref<32x384xbf16, #tpu.memory_space<vmem>>, %arg3: memref<1x384xf32, #tpu.memory_space<vmem>>, %arg4: memref<32x16xbf16, #tpu.memory_space<vmem>>, %arg5: memref<1x16xf32, #tpu.memory_space<vmem>>, %arg6: memref<16x32xbf16, #tpu.memory_space<vmem>>, %arg7: memref<1x32xf32, #tpu.memory_space<vmem>>, %arg8: memref<2x256xf32, #tpu.memory_space<vmem>>, %arg9: memref<2x64xbf16, #tpu.memory_space<vmem>>) attributes {dimension_semantics = [#tpu.dimension_semantics<parallel>], iteration_bounds = array<i64: 1>, scalar_prefetch = 0 : i64, scratch_operands = 0 : i64, tpu.core_type = #tpu.core_type<tc>, window_params = [{transform_indices = @transform_0, window_bounds = array<i64: 2, 8, 32>}, {pipeline_mode = #tpu.pipeline_mode<synchronous>, transform_indices = @transform_1, window_bounds = array<i64: 32, 384>}, {pipeline_mode = #tpu.pipeline_mode<synchronous>, transform_indices = @transform_2, window_bounds = array<i64: 1, 384>}, {pipeline_mode = #tpu.pipeline_mode<synchronous>, transform_indices = @transform_3, window_bounds = array<i64: 32, 16>}, {pipeline_mode = #tpu.pipeline_mode<synchronous>, transform_indices = @transform_4, window_bounds = array<i64: 1, 16>}, {pipeline_mode = #tpu.pipeline_mode<synchronous>, transform_indices = @transform_5, window_bounds = array<i64: 16, 32>}, {pipeline_mode = #tpu.pipeline_mode<synchronous>, transform_indices = @transform_6, window_bounds = array<i64: 1, 32>}, {transform_indices = @transform_7, window_bounds = array<i64: 2, 256>}, {transform_indices = @transform_8, window_bounds = array<i64: 2, 64>}]} {
    %c0 = arith.constant 0 : index
    %c0_0 = arith.constant 0 : index
    %c0_1 = arith.constant 0 : index
    %0 = vector.load %arg1[%c0, %c0_0, %c0_1] : memref<2x8x32xf32, #tpu.memory_space<vmem>>, vector<2x8x32xf32>
    %1 = vector.shape_cast %0 : vector<2x8x32xf32> to vector<16x32xf32>
    %2 = arith.truncf %1 : vector<16x32xf32> to vector<16x32xbf16>
    %c0_2 = arith.constant 0 : index
    %c0_3 = arith.constant 0 : index
    %3 = vector.load %arg2[%c0_2, %c0_3] : memref<32x384xbf16, #tpu.memory_space<vmem>>, vector<32x384xbf16>
    %cst = arith.constant dense<0.000000e+00> : vector<16x384xf32>
    %4 = tpu.matmul %2, %3, %cst {dimension_numbers = #tpu.dot_dimension_numbers<[1], [0], [0], [1], [0, 0, 1, 1], [], []>} : vector<16x32xbf16>, vector<32x384xbf16>, vector<16x384xf32> -> vector<16x384xf32>
    %c0_4 = arith.constant 0 : index
    %c0_5 = arith.constant 0 : index
    %5 = vector.load %arg3[%c0_4, %c0_5] : memref<1x384xf32, #tpu.memory_space<vmem>>, vector<1x384xf32>
    %6 = vector.broadcast %5 : vector<1x384xf32> to vector<16x384xf32>
    %7 = arith.addf %4, %6 : vector<16x384xf32>
    %8 = vector.extract_strided_slice %7 {offsets = [0, 0], sizes = [16, 128], strides = [1, 1]} : vector<16x384xf32> to vector<16x128xf32>
    %9 = vector.shape_cast %8 : vector<16x128xf32> to vector<2x8x128xf32>
    %10 = vector.extract_strided_slice %7 {offsets = [0, 128], sizes = [16, 128], strides = [1, 1]} : vector<16x384xf32> to vector<16x128xf32>
    %11 = vector.shape_cast %10 : vector<16x128xf32> to vector<2x8x128xf32>
    %12 = vector.extract_strided_slice %7 {offsets = [0, 256], sizes = [16, 128], strides = [1, 1]} : vector<16x384xf32> to vector<16x128xf32>
    %13 = vector.shape_cast %12 : vector<16x128xf32> to vector<2x8x128xf32>
    %14 = arith.truncf %9 : vector<2x8x128xf32> to vector<2x8x128xbf16>
    %15 = arith.truncf %11 : vector<2x8x128xf32> to vector<2x8x128xbf16>
    %cst_6 = arith.constant dense<0.000000e+00> : vector<2x8x8xf32>
    %16 = tpu.matmul %14, %15, %cst_6 {dimension_numbers = #tpu.dot_dimension_numbers<[2], [2], [1], [1], [0, 0, 0, 1, 1, 1], [0], [0]>} : vector<2x8x128xbf16>, vector<2x8x128xbf16>, vector<2x8x8xf32> -> vector<2x8x8xf32>
    %cst_7 = arith.constant dense<0xFF800000> : vector<2x8xf32>
    %17 = vector.multi_reduction <maximumf>, %16, %cst_7 [2] : vector<2x8x8xf32> to vector<2x8xf32>
    %18 = vector.shape_cast %17 : vector<2x8xf32> to vector<2x8x1xf32>
    %19 = vector.broadcast %18 : vector<2x8x1xf32> to vector<2x8x8xf32>
    %20 = arith.subf %16, %19 : vector<2x8x8xf32>
    %21 = math.exp %20 : vector<2x8x8xf32>
    %cst_8 = arith.constant dense<0.000000e+00> : vector<2x8xf32>
    %22 = vector.multi_reduction <add>, %21, %cst_8 [2] : vector<2x8x8xf32> to vector<2x8xf32>
    %23 = vector.shape_cast %22 : vector<2x8xf32> to vector<2x8x1xf32>
    %24 = tpu.reciprocal %23 {approx = true} : vector<2x8x1xf32> -> vector<2x8x1xf32>
    %25 = vector.broadcast %24 : vector<2x8x1xf32> to vector<2x8x8xf32>
    %26 = arith.mulf %21, %25 : vector<2x8x8xf32>
    %27 = arith.truncf %26 : vector<2x8x8xf32> to vector<2x8x8xbf16>
    %28 = arith.truncf %13 : vector<2x8x128xf32> to vector<2x8x128xbf16>
    %cst_9 = arith.constant dense<0.000000e+00> : vector<2x8x128xf32>
    %29 = tpu.matmul %27, %28, %cst_9 {dimension_numbers = #tpu.dot_dimension_numbers<[2], [1], [1], [2], [0, 0, 0, 1, 1, 2], [0], [0]>} : vector<2x8x8xbf16>, vector<2x8x128xbf16>, vector<2x8x128xf32> -> vector<2x8x128xf32>
    %cst_10 = arith.constant dense<0.000000e+00> : vector<2x32xf32>
    %30 = vector.multi_reduction <add>, %0, %cst_10 [1] : vector<2x8x32xf32> to vector<2x32xf32>
    %cst_11 = arith.constant 8.000000e+00 : f32
    %31 = vector.broadcast %cst_11 : f32 to vector<2x32xf32>
    %32 = arith.divf %30, %31 : vector<2x32xf32>
    %33 = arith.truncf %32 : vector<2x32xf32> to vector<2x32xbf16>
    %c0_12 = arith.constant 0 : index
    %c0_13 = arith.constant 0 : index
    %34 = vector.load %arg4[%c0_12, %c0_13] : memref<32x16xbf16, #tpu.memory_space<vmem>>, vector<32x16xbf16>
    %cst_14 = arith.constant dense<0.000000e+00> : vector<2x16xf32>
    %35 = tpu.matmul %33, %34, %cst_14 {dimension_numbers = #tpu.dot_dimension_numbers<[1], [0], [0], [1], [0, 0, 1, 1], [], []>} : vector<2x32xbf16>, vector<32x16xbf16>, vector<2x16xf32> -> vector<2x16xf32>
    %c0_15 = arith.constant 0 : index
    %c0_16 = arith.constant 0 : index
    %36 = vector.load %arg5[%c0_15, %c0_16] : memref<1x16xf32, #tpu.memory_space<vmem>>, vector<1x16xf32>
    %37 = vector.broadcast %36 : vector<1x16xf32> to vector<2x16xf32>
    %38 = arith.addf %35, %37 : vector<2x16xf32>
    %39 = arith.truncf %38 : vector<2x16xf32> to vector<2x16xbf16>
    %c0_17 = arith.constant 0 : index
    %c0_18 = arith.constant 0 : index
    %40 = vector.load %arg6[%c0_17, %c0_18] : memref<16x32xbf16, #tpu.memory_space<vmem>>, vector<16x32xbf16>
    %cst_19 = arith.constant dense<0.000000e+00> : vector<2x32xf32>
    %41 = tpu.matmul %39, %40, %cst_19 {dimension_numbers = #tpu.dot_dimension_numbers<[1], [0], [0], [1], [0, 0, 1, 1], [], []>} : vector<2x16xbf16>, vector<16x32xbf16>, vector<2x32xf32> -> vector<2x32xf32>
    %c0_20 = arith.constant 0 : index
    %c0_21 = arith.constant 0 : index
    %42 = vector.load %arg7[%c0_20, %c0_21] : memref<1x32xf32, #tpu.memory_space<vmem>>, vector<1x32xf32>
    %43 = vector.broadcast %42 : vector<1x32xf32> to vector<2x32xf32>
    %44 = arith.addf %41, %43 : vector<2x32xf32>
    %45 = arith.negf %44 : vector<2x32xf32>
    %46 = math.exp %45 : vector<2x32xf32>
    %cst_22 = arith.constant 1.000000e+00 : f32
    %47 = vector.broadcast %cst_22 : f32 to vector<2x32xf32>
    %48 = arith.addf %47, %46 : vector<2x32xf32>
    %49 = arith.divf %47, %48 : vector<2x32xf32>
    %50 = vector.shape_cast %49 : vector<2x32xf32> to vector<2x1x32xf32>
    %51 = vector.broadcast %50 : vector<2x1x32xf32> to vector<2x8x32xf32>
    %52 = arith.mulf %0, %51 : vector<2x8x32xf32>
    %53 = vector.extract_strided_slice %29 {offsets = [0, 0, 0], sizes = [2, 8, 32], strides = [1, 1, 1]} : vector<2x8x128xf32> to vector<2x8x32xf32>
    %54 = arith.addf %53, %52 : vector<2x8x32xf32>
    %55 = arith.truncf %26 : vector<2x8x8xf32> to vector<2x8x8xbf16>
    %56 = vector.shape_cast %54 : vector<2x8x32xf32> to vector<2x256xf32>
    %c0_23 = arith.constant 0 : index
    %c0_24 = arith.constant 0 : index
    %57 = vector.load %arg8[%c0_23, %c0_24] : memref<2x256xf32, #tpu.memory_space<vmem>>, vector<2x256xf32>
    tpu.vector_store %arg8[%c0_23, %c0_24], %56 {strides = array<i32>} : memref<2x256xf32, #tpu.memory_space<vmem>>, vector<2x256xf32>,
    %58 = vector.shape_cast %55 : vector<2x8x8xbf16> to vector<2x64xbf16>
    %c0_25 = arith.constant 0 : index
    %c0_26 = arith.constant 0 : index
    %59 = vector.load %arg9[%c0_25, %c0_26] : memref<2x64xbf16, #tpu.memory_space<vmem>>, vector<2x64xbf16>
    tpu.vector_store %arg9[%c0_25, %c0_26], %58 {strides = array<i32>} : memref<2x64xbf16, #tpu.memory_space<vmem>>, vector<2x64xbf16>,
    return
  }
  func.func @transform_0(%arg0: i32) -> (i32, i32, i32) {
    %c0_i32 = arith.constant 0 : i32
    %c0_i32_0 = arith.constant 0 : i32
    %c0_i32_1 = arith.constant 0 : i32
    return %arg0, %c0_i32, %c0_i32_0 : i32, i32, i32
  }
  func.func @transform_1(%arg0: i32) -> (i32, i32) {
    %c0_i32 = arith.constant 0 : i32
    %c0_i32_0 = arith.constant 0 : i32
    %c0_i32_1 = arith.constant 0 : i32
    return %c0_i32, %c0_i32_0 : i32, i32
  }
  func.func @transform_2(%arg0: i32) -> (i32, i32) {
    %c0_i32 = arith.constant 0 : i32
    %c0_i32_0 = arith.constant 0 : i32
    %c0_i32_1 = arith.constant 0 : i32
    return %c0_i32, %c0_i32_0 : i32, i32
  }
  func.func @transform_3(%arg0: i32) -> (i32, i32) {
    %c0_i32 = arith.constant 0 : i32
    %c0_i32_0 = arith.constant 0 : i32
    %c0_i32_1 = arith.constant 0 : i32
    return %c0_i32, %c0_i32_0 : i32, i32
  }
  func.func @transform_4(%arg0: i32) -> (i32, i32) {
    %c0_i32 = arith.constant 0 : i32
    %c0_i32_0 = arith.constant 0 : i32
    %c0_i32_1 = arith.constant 0 : i32
    return %c0_i32, %c0_i32_0 : i32, i32
  }
  func.func @transform_5(%arg0: i32) -> (i32, i32) {
    %c0_i32 = arith.constant 0 : i32
    %c0_i32_0 = arith.constant 0 : i32
    %c0_i32_1 = arith.constant 0 : i32
    return %c0_i32, %c0_i32_0 : i32, i32
  }
  func.func @transform_6(%arg0: i32) -> (i32, i32) {
    %c0_i32 = arith.constant 0 : i32
    %c0_i32_0 = arith.constant 0 : i32
    %c0_i32_1 = arith.constant 0 : i32
    return %c0_i32, %c0_i32_0 : i32, i32
  }
  func.func @transform_7(%arg0: i32) -> (i32, i32) {
    %c0_i32 = arith.constant 0 : i32
    %c0_i32_0 = arith.constant 0 : i32
    return %arg0, %c0_i32 : i32, i32
  }
  func.func @transform_8(%arg0: i32) -> (i32, i32) {
    %c0_i32 = arith.constant 0 : i32
    %c0_i32_0 = arith.constant 0 : i32
    return %arg0, %c0_i32 : i32, i32
  }
}

</mosaic_0001>

<bundles_post_ra>
// kernel: tpu_custom_call.1
= control target key start
LH: loop header
LB: loop body
LE: loop exit
PB: predicated region body
PF: predicated region fallthrough
CT: control target
= control target key end

     0   :  { %14 = vsyncpa [#allocation3], 0  ;;  %s1294_s0 = inlined_call_operand.vmem [shape: f32[2,8,32], index: 0, kind: input, shape index: {}]   ;;  %s1295_s1 = inlined_call_operand.hbm [shape: bf16[32,384], index: 1, kind: input, shape index: {}]   ;;  %s1296_s2 = inlined_call_operand.vmem [shape: f32[1,384], index: 2, kind: input, shape index: {}]   ;;  %s1297_s3 = inlined_call_operand.vmem [shape: bf16[32,16], index: 3, kind: input, shape index: {}]   ;;  %s1298_s4 = inlined_call_operand.vmem [shape: f32[1,16], index: 4, kind: input, shape index: {}]   ;;  %s1299_s5 = inlined_call_operand.vmem [shape: bf16[16,32], index: 5, kind: input, shape index: {}]   ;;  %s1300_s6 = inlined_call_operand.vmem [shape: f32[1,32], index: 6, kind: input, shape index: {}]   ;;  %s1301_s7 = inlined_call_operand.hbm [shape: f32[2,256], index: 7, kind: output, shape index: {0}]   ;;  %s1302_s8 = inlined_call_operand.hbm [shape: bf16[2,64], index: 8, kind: output, shape index: {1}]  }
   0x1   :  { %15 = vsyncpa [#allocation4], 0 }
   0x2   :  { %16 = vsyncpa [#allocation7], 0  ;;  %s1035_s27 = smov [#allocation2]   ;;  %s963_s9 = scalar_lea.hbm %s1295_s1, 768 }
   0x3   :  { %s24_s28 = sshll.u32 %s1035_s27, 4  ;;  %p964_p0 = scmp.ne.s32.totalorder %s1295_s1, %s963_s9  ;;  %s25_s28 = int_to_ptr.vmem [resolvable:$true] %s24_s28 }
   0x4   :  { %p967_p1 = scmp.lt.u32.totalorder %s963_s9, %s1295_s1 }
   0x6   :  { %p969_p2 = pnand %p967_p1, %p964_p0 }
   0x8   :  { %972 = shalt.err (!%p969_p2)
}
   0x9   :  { %s973_s14 = scalar_lea.vmem %s25_s28, 768  ;;  %p978_p4 = scmp.lt.s32.totalorder %s25_s28, %s25_s28 }
   0xa   :  { %p974_p3 = scmp.ne.s32.totalorder %s25_s28, %s973_s14  ;;  %p979_p5 = scmp.lt.s32.totalorder %s973_s14, %s973_s14 }
   0xc   :  { %p980_p6 = por %p979_p5, %p978_p4 }
   0xe   :  { %p981_p7 = pnand %p980_p6, %p974_p3 }
  0x10   :  { %984 = shalt.err (!%p981_p7)
}
  0x11   :  { %s1036_s15 = smov 192   ;;  %s1037_s16 = smov 12  }
  0x12   :  { %30 = dma.hbm_to_vmem [thread:$0]  %s1295_s1, 768, %s25_s28, [#allocation3], %s1036_s15, %s1036_s15, %s1037_s16  }
  0x13   :  { %1029 = dma.done.wait [#allocation3], 768  }
  0x14   :  { %1030 = vsyncadd [#allocation3], 4294966528  ;;  %v1038_v0 = vmov 0   ;;  %v1039_v1 = vmov 0.0   ;;  %v940_v2 = vld [vmem:[#allocation2 + $0x4] ss:$12 sps:$4 sm:$0xff]   ;;  %v58_v11 = vlaneseq }
  0x15   :  { %141 = vmatprep.mubr.bf16.mxu0 %v1038_v0  ;;  %874 = vmatprep.subr.bf16.mxu1 %v1039_v1  ;;  %v942_v3 = vld [vmem:[#allocation2] ss:$12 sps:$4 sm:$0xff]   ;;  %v943_v4 = vld [vmem:[#allocation2 + $0x1c] ss:$12 sps:$4 sm:$0xff]   ;;  %v945_v5 = vld [vmem:[#allocation2 + $0x18] ss:$12 sps:$4 sm:$0xff]  }
  0x16   :  { %109 = vmatprep.subr.bf16.mxu0 %v940_v2  ;;  %v1117_v6 = vld [vmem:[%s1294_s0] sm:$0xff]  ;;  %v1122_v7 = vld [vmem:[%s1294_s0 + $0x8] sm:$0xff]  ;;  %vm105_vm0 = vcmask 261120   ;;  %vm1040_vm1 = vmmov 0   ;;  %v1137_v12 = vshrl.u32 %v58_v11, 7  ;;  %vm307_vm2 = vcmask 1043456  }
  0x17   :  { %110 = vmatpush1.bf16.msra.mxu0 %v942_v3  ;;  %v946_v8 = vld [vmem:[#allocation2 + $0x8] ss:$12 sps:$4 sm:$0xff]   ;;  %v47_v9 = vpack.c.bf16 %v1122_v7, %v1117_v6  ;;  %v947_v10 = vld [vmem:[#allocation2 + $0x20] ss:$12 sps:$4 sm:$0xff]   ;;  %878 = vmatprep.mubr.msk.bf16.mxu1 %vm1040_vm1, %v1039_v1  ;;  %vm277_vm3 = vcmask 64512   ;;  %v397_v62 = vsel %vm105_vm0, %v1117_v6, 0.0 }
  0x18   :  { %111 = vmatprep.subr.bf16.mxu0 %v943_v4  ;;  %875 = vmatpush3.bf16.msra.mxu1 %v946_v8  ;;  %v64_v13 = vsub.s32 1, %v1137_v12  ;;  %v56_v14 = vld [vmem:[%s1296_s2] sm:$0x7]  ;;  %v1144_v16 = vsub.s32 0, %v1137_v12  ;;  %v68_v30 = vsub.s32 2, %v1137_v12  ;;  %v404_v63 = vsel %vm105_vm0, %v1122_v7, 0.0 }
  0x19   :  { %876 = vmatprep.subr.bf16.mxu1 %v1039_v1  ;;  %v398_v2 = vrot.slane %v397_v62, 4  ;;  %v405_v3 = vrot.slane %v404_v63, 4  ;;  %vm431_vm4 = vcmask 1041409   ;;  %s1044_s26 = smov 16   ;;  %s1045_s27 = smov 24   ;;  %vm505_vm5 = vcmask 130048  }
  0x1a   :  { %v65_v15 = vrot.slane %v56_v14, %v64_v13  ;;  %v61_v21 = vrot.slane %v56_v14, %v1144_v16  ;;  %v69_v31 = vrot.slane %v56_v14, %v68_v30  ;;  %s1046_s28 = smov 32   ;;  %s1047_s29 = smov 40   ;;  %vm683_vm6 = vcmask 523264  }
  0x1b   :  { %112 = vmatpush1.bf16.msra.mxu0 %v945_v5  ;;  %v399_v4 = vadd.f32 %v398_v2, %v397_v62  ;;  %v406_v5 = vadd.f32 %v405_v3, %v404_v63  ;;  %s1051_s13 = smov 56   ;;  %s1052_s14 = smov 48   ;;  %vm793_vm7 = vcmask 195584   ;;  %vm685_vm8 = vcmask 785408  }
  0x1c   :  { %882 = vmatprep.subr.bf16.mxu0 %v1039_v1  ;;  %877 = vmatpush3.bf16.msra.mxu1 %v947_v10  ;;  %s1053_s15 = smov [#allocation5]   ;;  %vm798_vm9 = vcmask 326656   ;;  %s1054_s17 = smov [#allocation6]   ;;  %vm801_vm10 = vcmask 392192   ;;  %vm804_vm11 = vcmask 457728   ;;  %vm808_vm12 = vcmask 516096  }
  0x1d   :  { %888 = vmatprep.subr.bf16.mxu1 %v1039_v1  ;;  %v400_v8 = vrot.slane %v399_v4, 2  ;;  %s816_s16 = sshll.u32 %s1053_s15, 4  ;;  %s826_s18 = sshll.u32 %s1054_s17, 4  ;;  %s817_s16 = int_to_ptr.vmem [resolvable:$true] %s816_s16  ;;  %s1260_s18 = int_to_ptr.vmem [resolvable:$true] %s826_s18 }
  0x1e   :  { %845 = vmatmul.mubr.msk.bf16.vlgmr.msra.gmra.mrb[0].mxu0 %vm105_vm0, %v47_v9  ;;  %s985_s19 = scalar_lea.vmem %s817_s16, 64  ;;  %p990_p9 = scmp.lt.s32.totalorder %s817_s16, %s817_s16 }
  0x1f   :  { %884 = vmatprep.mubr.msk.bf16.mxu0 %vm1040_vm1, %v1039_v1  ;;  %879 = vmatmul.mubr.msk.bf16.vlgmr.msra.gmra.mrb[0].mxu1 %vm105_vm0, %v47_v9  ;;  %v407_v9 = vrot.slane %v406_v5, 2  ;;  %v401_v10 = vadd.f32 %v400_v8, %v399_v4  ;;  %p986_p8 = scmp.ne.s32.totalorder %s817_s16, %s985_s19  ;;  %p991_p10 = scmp.lt.s32.totalorder %s985_s19, %s985_s19 }
  0x20   :  { %890 = vmatprep.mubr.msk.bf16.mxu1 %vm1040_vm1, %v1039_v1 }
  0x21   :  { %v408_v11 = vadd.f32 %v407_v9, %v406_v5  ;;  %v402_v13 = vrot.slane %v401_v10, 1  ;;  %p992_p11 = por %p991_p10, %p990_p9 }
  0x23   :  { %v409_v14 = vrot.slane %v408_v11, 1  ;;  %p993_p12 = pnand %p992_p11, %p986_p8 }
  0xf1   :  { %v143_v17 = vpop.f32.mrb[0].mxu0 }
  0xf2   :  { %v145_v18 = vpop.f32.mrb[1].mxu0  ;;  %v144_v26 = vadd.f32 %v143_v17, %v61_v21  ;;  %v186_v32 = vpop.f32.mrb[0].mxu1  ;;  %v403_v17 = vadd.f32 %v402_v13, %v401_v10 }
  0xf3   :  { %v146_v19 = vadd.f32 %v145_v18, %v65_v15  ;;  %v147_v20 = vpop.f32.mrb[2].mxu0  ;;  %v187_v33 = vadd.f32 %v186_v32, %v69_v31  ;;  %v880_v34 = vpop.f32.mrb[1].mxu1  ;;  %v410_v18 = vadd.f32 %v409_v14, %v408_v11  ;;  %v950_v11 = vld [vmem:[%s1299_s5] sm:$0xff]  }
  0xf4   :  { %v149_v22 = vpop.f32.mrb[3].mxu0  ;;  %v148_v27 = vadd.f32 %v147_v20, %v61_v21  ;;  %v193_v28 = vpack.c.bf16 %v144_v26, %v144_v26  ;;  %v189_v35 = vpop.f32.mrb[2].mxu1  ;;  %v1041_v20 = vmov 1983009808   ;;  %v948_v34 = vld [vmem:[%s1297_s3] sm:$0xff]  }
  0xf5   :  { %v195_v23 = vpack.c.bf16 %v146_v19, %v146_v19  ;;  %v150_v24 = vadd.f32 %v149_v22, %v65_v15  ;;  %v302_v36 = vpack.c.bf16 %v187_v33, %v187_v33  ;;  %v190_v37 = vadd.f32 %v189_v35, %v69_v31  ;;  %v881_v38 = vpop.f32.mrb[3].mxu1 }
  0xf6   :  { %v194_v29 = vpack.c.bf16 %v148_v27, %v148_v27  ;;  %v594_v21 = vunpack.c.l.s4 %v1041_v20  ;;  %v412_v22 = vmul.f32 0.125, %v403_v17 }
  0xf7   :  { %v196_v25 = vpack.c.bf16 %v150_v24, %v150_v24  ;;  %883 = vmatpush3.bf16.xpose.msra.mxu0 %v195_v23  ;;  %v309_v39 = vsel %vm307_vm2, %v302_v36, 0  ;;  %v303_v40 = vpack.c.bf16 %v190_v37, %v190_v37  ;;  %v413_v23 = vmul.f32 0.125, %v410_v18 }
  0xf8   :  { %894 = vmatprep.subr.bf16.mxu0 %v1039_v1  ;;  %v1042_v24 = vmov 1934713408   ;;  %v595_v26 = vunpack.c.0.s8 %v594_v21  ;;  %v414_v27 = vpack.c.bf16 %v412_v22, %v412_v22  ;;  %v849_v22 = vld [vmem:[%s1298_s4] ss:$0 sm:$0xff]  ;;  %s1049_s4 = smov 64  }
  0xf9   :  { %889 = vmatpush3.bf16.xpose.msra.mxu1 %v196_v25  ;;  %v355_v41 = vsel %vm307_vm2, %v303_v40, 0  ;;  %v625_v25 = vunpack.c.l.s4 %v1042_v24 }
  0xfa   :  { %900 = vmatprep.subr.bf16.mxu1 %v1039_v1  ;;  %v1165_v32 = vsub.s32 %v595_v26, %v1137_v12  ;;  %v429_v35 = vunpack.c.l.b16 %v414_v27 }
  0xfe   :  { %885 = vmatmul.mubr.bf16.vlgmr.msra.gmra.mrb[4].mxu0 %v193_v28  ;;  %v415_v28 = vpack.c.bf16 %v413_v23, %v413_v23 }
  0xff   :  { %896 = vmatprep.mubr.msk.bf16.mxu0 %vm1040_vm1, %v1039_v1  ;;  %895 = vmatpush3.bf16.msra.mxu0 %v309_v39 }
 0x100   :  { %891 = vmatmul.mubr.bf16.vlgmr.msra.gmra.mrb[4].mxu1 %v194_v29  ;;  %906 = vmatprep.subr.bf16.mxu0 %v1039_v1  ;;  %v626_v29 = vunpack.c.0.s8 %v625_v25  ;;  %v430_v36 = vunpack.c.l.b16 %v415_v28 }
 0x101   :  { %902 = vmatprep.mubr.msk.bf16.mxu1 %vm1040_vm1, %v1039_v1  ;;  %901 = vmatpush3.bf16.msra.mxu1 %v355_v41 }
 0x102   :  { %914 = vmatprep.subr.bf16.mxu1 %v1039_v1  ;;  %v1171_v39 = vsub.s32 %v626_v29, %v1137_v12  ;;  %v853_v29 = vld [vmem:[%s1300_s6] ss:$0 sm:$0xff]  ;;  %s1050_s6 = smov 96  }
 0x1d1   :  { %v231_v42 = vpop.f32.mrb[4].mxu0 }
 0x1d2   :  { %v886_v43 = vpop.f32.mrb[5].mxu0  ;;  %v278_v44 = vsel %vm277_vm3, %v231_v42, -inf }
 0x1d3   :  { %v271_v45 = vpop.f32.mrb[4].mxu1  ;;  %279 = vmax.xlane.f32.xlu0 %v278_v44  ;;  %v234_v46 = vpop.f32.mrb[6].mxu0  ;;  %v432_v43 = vsel %vm431_vm4, %v430_v36, %v429_v35 }
 0x1d4   :  { %v887_v47 = vpop.f32.mrb[7].mxu0  ;;  %v892_v48 = vpop.f32.mrb[5].mxu1  ;;  %v281_v49 = vsel %vm277_vm3, %v271_v45, -inf }
 0x1d5   :  { %282 = vmax.xlane.f32.xlu1 %v281_v49  ;;  %v274_v50 = vpop.f32.mrb[6].mxu1  ;;  %v433_v47 = vpack.c.b16 %v432_v43, %v432_v43 }
 0x1d6   :  { %v893_v51 = vpop.f32.mrb[7].mxu1 }
 0x260   :  { %v280_v52 = vpop.xlane.xlu0 %279 }
 0x261   :  { %v284_v53 = vsub.f32 %v231_v42, %v280_v52  ;;  %v949_v42 = vld [vmem:[%s1297_s3 + $0x8] sm:$0xff]   ;;  %s1043_s3 = smov 8  }
 0x262   :  { %v283_v54 = vpop.xlane.xlu1 %282 }
 0x263   :  { %v286_v55 = vmul.f32 1.442695, %v284_v53  ;;  %v285_v56 = vsub.f32 %v271_v45, %v283_v54 }
 0x265   :  { %951 = vpow2.f32 %v286_v55  ;;  %v288_v57 = vmul.f32 1.442695, %v285_v56 }
 0x267   :  { %953 = vpow2.f32 %v288_v57 }
 0x26f   :  { %v952_v58 = vpop.eup %951 }
 0x270   :  { %v290_v59 = vsel %vm277_vm3, %v952_v58, 0.0 }
 0x271   :  { %v954_v60 = vpop.eup %953  ;;  %291 = vadd.xlane.f32.xlu0 %v290_v59 }
 0x272   :  { %v293_v61 = vsel %vm277_vm3, %v954_v60, 0.0 }
 0x273   :  { %294 = vadd.xlane.f32.xlu1 %v293_v61 }
 0x2fe   :  { %v292_v15 = vpop.xlane.xlu0 %291 }
 0x2ff   :  { %955 = vrcp.f32 %v292_v15 }
 0x300   :  { %v295_v19 = vpop.xlane.xlu1 %294 }
 0x301   :  { %957 = vrcp.f32 %v295_v19 }
 0x309   :  { %v956_v30 = vpop.eup %955 }
 0x30a   :  { %v298_v31 = vmul.f32 %v956_v30, %v952_v58 }
 0x30b   :  { %v958_v33 = vpop.eup %957 }
 0x30c   :  { %v299_v37 = vmul.f32 %v958_v33, %v954_v60  ;;  %v300_v38 = vpack.c.bf16 %v298_v31, %v298_v31 }
 0x30e   :  { %897 = vmatmul.mubr.msk.bf16.vlgmr.msra.gmra.mrb[8].mxu0 %vm277_vm3, %v300_v38  ;;  %v301_v40 = vpack.c.bf16 %v299_v37, %v299_v37  ;;  %v708_v41 = vrot.slane %v300_v38, %v1165_v32 }
 0x30f   :  { %907 = vmatpush3.bf16.msra.mxu0 %v948_v34  ;;  %910 = vmatprep.mubr.msk.bf16.mxu0 %vm1040_vm1, %v1039_v1 }
 0x310   :  { %903 = vmatmul.mubr.msk.bf16.vlgmr.msra.gmra.mrb[8].mxu1 %vm277_vm3, %v301_v40  ;;  %908 = vmatprep.subr.bf16.mxu0 %v1039_v1  ;;  %v1183_v44 = vrot.slane %v708_v41, %v1171_v39  ;;  %v732_v45 = vrot.slane %v301_v40, %v1165_v32  ;;  %v709_v46 = vcombine.high %v708_v41, %v1038_v0  ;;  %v1048_v40 = vmov 1966171168  }
 0x311   :  { %916 = vmatprep.mubr.msk.bf16.mxu1 %vm1040_vm1, %v1039_v1  ;;  %915 = vmatpush3.bf16.msra.mxu1 %v950_v11  ;;  %v557_v41 = vunpack.c.l.s4 %v1048_v40 }
 0x312   :  { %v1190_v48 = vrot.slane %v732_v45, %v1171_v39  ;;  %v723_v49 = vrot.slane %v709_v46, %v1171_v39  ;;  %v733_v50 = vcombine.high %v732_v45, %v1038_v0  ;;  %v753_v51 = vshrl.u32 %v1183_v44, 16 }
 0x313   :  { %909 = vmatpush3.bf16.msra.mxu0 %v949_v42  ;;  %v724_v53 = vcombine.high %v1183_v44, %v1038_v0  ;;  %v558_v42 = vunpack.c.0.s8 %v557_v41 }
 0x314   :  { %v754_v52 = vshrl.u32 %v1190_v48, 16  ;;  %v748_v54 = vcombine.high %v1190_v48, %v1038_v0  ;;  %v747_v55 = vrot.slane %v733_v50, %v1171_v39  ;;  %v752_v56 = vpack.i.b16 %v1190_v48, %v1183_v44 }
 0x315   :  { %v1204_v57 = vcombine.high %v723_v49, %v1038_v0  ;;  %v759_v62 = vshrl.u32 %v724_v53, 16  ;;  %v561_v43 = vsub.s32 %v558_v42, %v1137_v12 }
 0x316   :  { %911 = vmatmul.mubr.msk.bf16.vlgmr.msra.gmra.mrb[12].mxu0 %vm105_vm0, %v433_v47  ;;  %v755_v58 = vpack.i.b16 %v754_v52, %v753_v51  ;;  %v758_v59 = vpack.i.b16 %v748_v54, %v724_v53  ;;  %v760_v60 = vshrl.u32 %v748_v54, 16  ;;  %v1208_v61 = vcombine.high %v747_v55, %v1038_v0 }
 0x317   :  { %v771_v63 = vshrl.u32 %v1204_v57, 16  ;;  %v764_v5 = vpack.i.b16 %v747_v55, %v723_v49  ;;  %v766_v8 = vshrl.u32 %v747_v55, 16  ;;  %v765_v0 = vshrl.u32 %v723_v49, 16 }
 0x318   :  { %774 = vrot.lane.b32.xlu0 %v755_v58, %s1043_s3  ;;  %776 = vrot.lane.b32.xlu1 %v758_v59, %s1044_s26  ;;  %v772_v2 = vshrl.u32 %v1208_v61, 16  ;;  %v770_v3 = vpack.i.b16 %v1208_v61, %v1204_v57  ;;  %v761_v4 = vpack.i.b16 %v760_v60, %v759_v62 }
 0x319   :  { %v767_v10 = vpack.i.b16 %v766_v8, %v765_v0 }
 0x31a   :  { %v1214_v9 = vpack.i.b16 %v772_v2, %v771_v63 }
 0x31c   :  { %778 = vrot.lane.b32.xlu0 %v761_v4, %s1045_s27  ;;  %780 = vrot.lane.b32.xlu1 %v764_v5, %s1046_s28 }
 0x320   :  { %782 = vrot.lane.b32.xlu0 %v767_v10, %s1047_s29 }
 0x3e1   :  { %v345_v13 = vpop.f32.mrb[8].mxu0 }
 0x3e2   :  { %v898_v14 = vpop.f32.mrb[9].mxu0 }
 0x3e3   :  { %v348_v15 = vpop.f32.mrb[10].mxu0  ;;  %v391_v17 = vpop.f32.mrb[8].mxu1 }
 0x3e4   :  { %v899_v18 = vpop.f32.mrb[11].mxu0  ;;  %v904_v19 = vpop.f32.mrb[9].mxu1 }
 0x3e5   :  { %v394_v20 = vpop.f32.mrb[10].mxu1  ;;  %v777_v15 = vpop.permute.xlu1 %776 }
 0x3e6   :  { %v905_v21 = vpop.f32.mrb[11].mxu1 }
 0x3e9   :  { %v483_v23 = vpop.f32.mrb[12].mxu0  ;;  %v781_v18 = vpop.permute.xlu1 %780 }
 0x3ea   :  { %v484_v24 = vadd.f32 %v849_v22, %v483_v23  ;;  %v912_v25 = vpop.f32.mrb[13].mxu0 }
 0x3eb   :  { %v486_v26 = vpop.f32.mrb[14].mxu0 }
 0x3ec   :  { %v489_v27 = vpack.c.bf16 %v484_v24, %v484_v24  ;;  %v913_v28 = vpop.f32.mrb[15].mxu0 }
 0x3ee   :  { %917 = vmatmul.mubr.msk.bf16.vlgmr.msra.gmra.mrb[12].mxu1 %vm505_vm5, %v489_v27 }
 0x4c1   :  { %v543_v30 = vpop.f32.mrb[12].mxu1 }
 0x4c2   :  { %v544_v31 = vadd.f32 %v853_v29, %v543_v30  ;;  %v918_v33 = vpop.f32.mrb[13].mxu1 }
 0x4c3   :  { %v546_v34 = vpop.f32.mrb[14].mxu1 }
 0x4c4   :  { %v856_v35 = vmul.f32 -1.442695, %v544_v31  ;;  %v919_v36 = vpop.f32.mrb[15].mxu1 }
 0x4c6   :  { %959 = vpow2.f32 %v856_v35 }
 0x4d0   :  { %v960_v37 = vpop.eup %959 }
 0x4d1   :  { %v552_v38 = vadd.f32 1.0, %v960_v37 }
 0x4d3   :  { %961 = vrcp.f32 %v552_v38 }
 0x4dd   :  { %v962_v45 = vpop.eup %961 }
 0x4de   :  { %v562_v46 = vrot.slane %v962_v45, %v561_v43 }
 0x4e0   :  { %v563_v47 = vcombine.high %v562_v46, %v562_v46  ;;  %v570_v49 = vrot.slane %v562_v46, %v561_v43 }
 0x4e2   :  { %v577_v50 = vrot.slane %v563_v47, %v561_v43  ;;  %v581_v51 = vrot.slane %v570_v49, %v1144_v16 }
 0x4e4   :  { %v585_v52 = vrot.slane %v577_v50, %v1144_v16  ;;  %v588_v53 = vmul.f32 %v581_v51, %v1117_v6 }
 0x4e6   :  { %v589_v54 = vmul.f32 %v585_v52, %v1122_v7  ;;  %v590_v55 = vadd.f32 %v588_v53, %v345_v13 }
 0x4e8   :  { %v591_v58 = vadd.f32 %v589_v54, %v391_v17  ;;  %v592_v59 = vcombine.high %v590_v55, %v1039_v1  ;;  %v599_v60 = vrot.slane %v590_v55, %v1165_v32 }
 0x4ea   :  { %v614_v12 = vrot.slane %v591_v58, %v1165_v32  ;;  %v607_v62 = vcombine.high %v591_v58, %v1039_v1  ;;  %v606_v2 = vrot.slane %v592_v59, %v1165_v32 }
 0x4ec   :  { %v623_v63 = vcombine.high %v599_v60, %v614_v12  ;;  %v621_v4 = vrot.slane %v607_v62, %v1165_v32  ;;  %v622_v16 = vcombine.low %v599_v60, %v614_v12 }
 0x4ee   :  { %v637_v6 = vrot.slane %v623_v63, %v1171_v39  ;;  %v639_v5 = vcombine.high %v606_v2, %v621_v4  ;;  %v630_v7 = vrot.slane %v622_v16, %v1171_v39  ;;  %v638_v8 = vcombine.low %v606_v2, %v621_v4 }
 0x4f0   :  { %663 = vrot.lane.b32.xlu1 %v637_v6, %s1049_s4  ;;  %v653_v0 = vrot.slane %v639_v5, %v1171_v39  ;;  %v654_v10 = vcombine.high %v630_v7, %v1039_v1  ;;  %v646_v11 = vrot.slane %v638_v8, %v1171_v39  ;;  %v655_v32 = vcombine.high %v637_v6, %v1039_v1  ;;  %v775_v39 = vpop.permute.xlu0 %774 }
 0x4f2   :  { %675 = vrot.lane.b32.xlu0 %v653_v0, %s1049_s4  ;;  %v656_v13 = vcombine.high %v646_v11, %v1039_v1  ;;  %v657_v14 = vcombine.high %v653_v0, %v1039_v1  ;;  %v790_v1 = vsel %vm277_vm3, %v752_v56, %v775_v39 }
 0x4f3   :  { %v792_v24 = vsel %vm505_vm5, %v790_v1, %v777_v15 }
 0x4f4   :  { %659 = vrot.lane.b32.xlu1 %v654_v10, %s1046_s28  ;;  %v779_v17 = vpop.permute.xlu0 %778 }
 0x4f5   :  { %v795_v25 = vsel %vm793_vm7, %v792_v24, %v779_v17 }
 0x4f6   :  { %667 = vrot.lane.b32.xlu0 %v655_v32, %s1050_s6  ;;  %v797_v48 = vsel %vm105_vm0, %v795_v25, %v781_v18 }
 0x4f8   :  { %671 = vrot.lane.b32.xlu1 %v656_v13, %s1046_s28  ;;  %v783_v19 = vpop.permute.xlu0 %782 }
 0x4f9   :  { %v800_v56 = vsel %vm798_vm9, %v797_v48, %v783_v19 }
 0x4fa   :  { %786 = vrot.lane.b32.xlu0 %v1214_v9, %s1051_s13 }
 0x4fc   :  { %679 = vrot.lane.b32.xlu1 %v657_v14, %s1050_s6 }
 0x500   :  { %784 = vrot.lane.b32.xlu1 %v770_v3, %s1052_s14 }
 0x562   :  { %v664_v20 = vpop.permute.xlu1 %663 }
 0x564   :  { %v676_v21 = vpop.permute.xlu0 %675 }
 0x566   :  { %v660_v22 = vpop.permute.xlu1 %659 }
 0x567   :  { %v682_v23 = vsel %vm105_vm0, %v630_v7, %v660_v22 }
 0x568   :  { %v684_v61 = vsel %vm683_vm6, %v682_v23, %v664_v20  ;;  %v668_v3 = vpop.permute.xlu0 %667 }
 0x569   :  { %v686_v28 = vsel %vm685_vm8, %v684_v61, %v668_v3 }
 0x56a   :  { %v672_v9 = vpop.permute.xlu1 %671 }
 0x56b   :  { %v687_v57 = vsel %vm105_vm0, %v646_v11, %v672_v9 }
 0x56c   :  { %v688_v26 = vsel %vm683_vm6, %v687_v57, %v676_v21  ;;  %v787_v31 = vpop.permute.xlu0 %786 }
 0x56e   :  { %v680_v27 = vpop.permute.xlu1 %679 }
 0x56f   :  { %v689_v29 = vsel %vm685_vm8, %v688_v26, %v680_v27 }
 0x570   :  { %v692_v44 = vcombine.low %v686_v28, %v689_v29 }
 0x572   :  { %857 = vst.sshfl [vmem:[#allocation5] sm:$0x33 pattern:$0x76325410] %v692_v44  ;;  %v785_v30 = vpop.permute.xlu1 %784 }
 0x573   :  { %v803_v33 = vsel %vm801_vm10, %v800_v56, %v785_v30 }
 0x574   :  { %996 = shalt.err (!%p993_p12)
}
 0x575   :  { %s997_s21 = scalar_lea.hbm %s1301_s7, 64 }
 0x576   :  { %p998_p13 = scmp.ne.s32.totalorder %s1301_s7, %s997_s21  ;;  %p1001_p0 = scmp.lt.u32.totalorder %s997_s21, %s1301_s7 }
 0x578   :  { %p1003_p1 = pnand %p1001_p0, %p998_p13 }
 0x57a   :  { %1006 = shalt.err (!%p1003_p1)
}
 0x57b   :  { %819 = dma.vmem_to_hbm [thread:$0]  %s817_s16, 64, %s1301_s7, [#allocation4]   ;;  %v806_v34 = vsel %vm804_vm11, %v803_v33, %v787_v31 }
 0x57c   :  { %809 = vst.msk [vmem:[#allocation6] sm:$0x1] %vm808_vm12, %v806_v34  ;;  %s1007_s3 = scalar_lea.vmem %s1260_s18, 16  ;;  %s1011_s26 = scalar_lea.vmem %s1260_s18, 32 }
 0x57d   :  { %p1008_p2 = scmp.ne.s32.totalorder %s1260_s18, %s1007_s3  ;;  %p1012_p3 = scmp.lt.s32.totalorder %s1260_s18, %s1260_s18 }
 0x57e   :  { %p1013_p4 = scmp.lt.s32.totalorder %s1011_s26, %s1007_s3 }
 0x580   :  { %p1014_p5 = por %p1013_p4, %p1012_p3 }
 0x582   :  { %p1015_p6 = pnand %p1014_p5, %p1008_p2 }
 0x584   :  { %1018 = shalt.err (!%p1015_p6)
}
 0x585   :  { %s1019_s29 = scalar_lea.hbm %s1302_s8, 16 }
 0x586   :  { %p1020_p7 = scmp.ne.s32.totalorder %s1302_s8, %s1019_s29  ;;  %p1023_p8 = scmp.lt.u32.totalorder %s1019_s29, %s1302_s8 }
 0x588   :  { %p1025_p9 = pnand %p1023_p8, %p1020_p7 }
 0x58a   :  { %1028 = shalt.err (!%p1025_p9)
}
 0x58b   :  { %829 = dma.vmem_to_hbm [thread:$0]  %s1260_s18, 16, %s1302_s8, [#allocation7]  }
 0x58c   :  { %1031 = dma.done.wait [#allocation4], 64  }
 0x58d   :  { %1032 = vsyncadd [#allocation4], 4294967232 }
 0x58e   :  { %1033 = dma.done.wait [#allocation7], 16  }
 0x58f   :  { %1034 = vsyncadd [#allocation7], 4294967280 }
 0x590   :  { %836 = vsyncpa [#allocation3], 1 }
 0x591   :  { %837 = vsyncpa [#allocation4], 1 }
 0x592   :  { %838 = vsyncpa [#allocation7], 1 }

</bundles_post_ra>
